<compile_context>
chip_gen: v5e
topology: v5e:2x2
jax: 0.10.0
libtpu: 0.0.40
codegen_flags: <defaults>
</compile_context>

<pallas_src>
import jax
import jax.numpy as jnp
import numpy as np
from jax.experimental import pallas as pl
from jax.experimental.pallas import tpu as pltpu

_EPS = 1e-5
_VMEM_LIMIT = 32 * 1024 * 1024          # safe scoped-VMEM limit on v5e/v6e/v7x
HANDOFF_DTYPE = jnp.float32             # review item (8): bf16 halves handoff
                                        # HBM traffic; kept f32 for tolerance.


# --------------------------- in-kernel helpers -----------------------------

def _pad_rows_and_conv(pad_ref, x3d, w_ref):
    """3x3 / stride-1 / pad-1 conv of one batch chunk, in lane-folded layout.

    x3d:     (N_b, H, W*Cin)       activations; W and C folded into lanes
    pad_ref: (N_b, H+2, W*Cin)     VMEM scratch; zero border rows are rewritten
                                   every step (grid axis may be 'parallel')
    w_ref:   (3, W*Cin, W*Cout)    banded weights: dx shifts + left/right zero
                                   padding folded into the band structure
    returns  (N_b*H, W*Cout) float32
    """
    nb, h, wc = x3d.shape
    wco = w_ref.shape[2]
    # Row padding only: full-minor, offset-0-lane stores (review item 10).
    pad_ref[:, 0:1, :] = jnp.zeros((nb, 1, wc), jnp.float32)
    pad_ref[:, h + 1:h + 2, :] = jnp.zeros((nb, 1, wc), jnp.float32)
    pad_ref[:, 1:1 + h, :] = x3d.astype(jnp.float32)

    acc = jnp.zeros((nb * h, wco), jnp.float32)
    for dy in range(3):                         # 3 matmuls, K = W*Cin
        win = pad_ref[:, dy:dy + h, :].reshape(nb * h, wc)
        acc = acc + jnp.dot(win, w_ref[dy], preferred_element_type=jnp.float32)
    return acc


def _channel_stats(y, sel):
    """Per-channel sum / sum-of-squares of a (rows, W*C) slab via a selection
    matmul (sel[x*C+c, c'] = delta(c, c')); avoids any lane-strided reduce."""
    s = jnp.sum(jnp.dot(y, sel, preferred_element_type=jnp.float32),
                axis=0, keepdims=True)
    q = jnp.sum(jnp.dot(y * y, sel, preferred_element_type=jnp.float32),
                axis=0, keepdims=True)
    return s, q


# ------------------------------- kernels ------------------------------------

def _conv1_stats_kernel(x_ref, w1_ref, sel_ref, y1_ref, s1_ref, q1_ref, pad_ref):
    """Pass A: conv1 over a whole batch chunk + per-chunk BN1 partial stats."""
    y1 = _pad_rows_and_conv(pad_ref, x_ref[...], w1_ref)
    s, q = _channel_stats(y1, sel_ref[...])
    y1_ref[...] = y1.astype(y1_ref.dtype)
    s1_ref[...] = s
    q1_ref[...] = q


def _bn1_relu_conv2_stats_kernel(y1_ref, sc1_ref, bi1_ref, w2_ref, sel_ref,
                                 y2_ref, s2_ref, q2_ref, pad_ref):
    """Pass B: folded BN1 affine + ReLU, conv2, per-chunk BN2 partial stats."""
    nb, hp2, wc = pad_ref.shape
    h = hp2 - 2
    a = jnp.maximum(
        y1_ref[...].astype(jnp.float32) * sc1_ref[...] + bi1_ref[...], 0.0)
    y2 = _pad_rows_and_conv(pad_ref, a.reshape(nb, h, wc), w2_ref)
    s, q = _channel_stats(y2, sel_ref[...])
    y2_ref[...] = y2.astype(y2_ref.dtype)
    s2_ref[...] = s
    q2_ref[...] = q


def _bn2_add_relu_kernel(y2_ref, res_ref, sc2_ref, bi2_ref, out_ref):
    """Pass C: folded BN2 affine + residual add + ReLU on one big slab."""
    out_ref[...] = jnp.maximum(
        y2_ref[...].astype(jnp.float32) * sc2_ref[...] + bi2_ref[...]
        + res_ref[...].astype(jnp.float32), 0.0).astype(out_ref.dtype)


# ------------------------------ wrapper --------------------------------------

def _band_conv_weights(w, width):
    """torch (Cout, Cin, 3, 3) -> (3, W*Cin, W*Cout) banded matrices (one per
    kernel row dy).  For each dy, (row_slab @ band[dy]) equals that row's
    contribution to the 3x3 / pad-1 conv: the dx shift and the left/right zero
    padding are encoded as off-diagonal identity blocks, so the kernel never
    shifts lanes or concatenates windows (review item 4)."""
    cout, cin, kh, kw = w.shape
    wt = jnp.transpose(w, (2, 3, 1, 0)).astype(jnp.float32)   # (dy, dx, ci, co)
    xs = jnp.arange(width)
    bands = []
    for dy in range(kh):
        acc = jnp.zeros((width, cin, width, cout), jnp.float32)
        for dx in range(kw):
            # out column x reads input column x + dx - 1 (zero if out of range)
            shift = (xs[:, None] == xs[None, :] + (dx - 1)).astype(jnp.float32)
            acc = acc + jnp.einsum('xy,io->xiyo', shift, wt[dy, dx])
        bands.append(acc.reshape(width * cin, width * cout))
    return jnp.stack(bands)                                    # (3, WCin, WCout)


def basic_block_forward(x_nchw, params):
    """x_nchw: (N, C, H, W) float32.  params = (w1, g1, b1, w2, g2, b2)."""
    w1, g1, b1, w2, g2, b2 = params
    n, c, h, w = x_nchw.shape
    wc = w * c

    # One batch chunk per grid step (review item 1).  At the validated size the
    # whole batch is one chunk; at scale, size n_b against ~1 MiB/step VMEM use
    # (item 7) and let the 'parallel' grid shard chunks across cores (item 2).
    n_b = n
    assert n % n_b == 0
    n_chunks = n // n_b
    rows, rows_b = n * h, n_b * h

    # Lane-folded layout: (N, H, W*C).  No jnp.pad copy in HBM (item 5).
    x_lanes = jnp.transpose(x_nchw, (0, 2, 3, 1)).astype(jnp.float32) \
                 .reshape(n, h, wc)
    w1b = _band_conv_weights(w1, w)
    w2b = _band_conv_weights(w2, w)
    sel = jnp.tile(jnp.eye(c, dtype=jnp.float32), (w, 1))        # (wc, c)

    cparams = pltpu.CompilerParams(
        dimension_semantics=("parallel",), vmem_limit_bytes=_VMEM_LIMIT)

    row_spec = pl.BlockSpec((rows_b, wc), lambda i: (i, 0))
    stat_spec = pl.BlockSpec((1, c), lambda i: (i, 0))
    band_spec = pl.BlockSpec((3, wc, wc), lambda i: (0, 0, 0))
    sel_spec = pl.BlockSpec((wc, c), lambda i: (0, 0))
    vec_spec = pl.BlockSpec((1, wc), lambda i: (0, 0))
    stat_shape = jax.ShapeDtypeStruct((n_chunks, c), jnp.float32)
    y_shape = jax.ShapeDtypeStruct((rows, wc), HANDOFF_DTYPE)

    # ---------------- pass A: conv1 + per-chunk BN1 partial stats ------------
    y1, s1, q1 = pl.pallas_call(
        _conv1_stats_kernel,
        grid=(n_chunks,),
        in_specs=[pl.BlockSpec((n_b, h, wc), lambda i: (i, 0, 0)),
                  band_spec, sel_spec],
        out_specs=(row_spec, stat_spec, stat_spec),
        out_shape=(y_shape, stat_shape, stat_shape),
        scratch_shapes=[pltpu.VMEM((n_b, h + 2, wc), jnp.float32)],
        compiler_params=cparams,
    )(x_lanes, w1b, sel)

    cnt = float(n * h * w)

    def finalize(s, q, g, b):
        mean = jnp.sum(s, axis=0) / cnt
        var = jnp.maximum(jnp.sum(q, axis=0) / cnt - mean * mean, 0.0)  # clamp
        scale = g * jax.lax.rsqrt(var + _EPS)
        bias = b - mean * scale
        # broadcast per-channel affine into the lane-folded (1, W*C) layout
        return (jnp.tile(scale, w).reshape(1, wc),
                jnp.tile(bias, w).reshape(1, wc))

    sc1, bi1 = finalize(s1, q1, g1, b1)

    # ---------- pass B: BN1 affine + ReLU + conv2 + BN2 partial stats --------
    y2, s2, q2 = pl.pallas_call(
        _bn1_relu_conv2_stats_kernel,
        grid=(n_chunks,),
        in_specs=[row_spec, vec_spec, vec_spec, band_spec, sel_spec],
        out_specs=(row_spec, stat_spec, stat_spec),
        out_shape=(y_shape, stat_shape, stat_shape),
        scratch_shapes=[pltpu.VMEM((n_b, h + 2, wc), jnp.float32)],
        compiler_params=cparams,
    )(y1, sc1, bi1, w2b, sel)

    sc2, bi2 = finalize(s2, q2, g2, b2)

    # -------- pass C: BN2 affine + residual + ReLU, whole slab in one step ---
    slab_spec = pl.BlockSpec((rows, wc), lambda i: (0, 0))
    out_rows = pl.pallas_call(
        _bn2_add_relu_kernel,
        grid=(1,),
        in_specs=[slab_spec, slab_spec, vec_spec, vec_spec],
        out_specs=slab_spec,
        out_shape=jax.ShapeDtypeStruct((rows, wc), jnp.float32),
        compiler_params=cparams,
    )(y2, x_lanes.reshape(rows, wc), sc2, bi2)

    return jnp.transpose(out_rows.reshape(n, h, w, c), (0, 3, 1, 2))   # NCHW


# ------------------------------ reference ------------------------------------

def reference_forward(x_nchw, params):
    """Pure-JAX (XLA) reference matching the PyTorch forward (training-mode BN)."""
    w1, g1, b1, w2, g2, b2 = params

    def conv(x, wt):
        return jax.lax.conv_general_dilated(
            x, wt, window_strides=(1, 1), padding=((1, 1), (1, 1)),
            dimension_numbers=('NCHW', 'OIHW', 'NCHW'))

    def bn(x, g, b):
        mean = jnp.mean(x, axis=(0, 2, 3), keepdims=True)
        var = jnp.mean((x - mean) ** 2, axis=(0, 2, 3), keepdims=True)
        return ((x - mean) * jax.lax.rsqrt(var + _EPS)
                * g.reshape(1, -1, 1, 1) + b.reshape(1, -1, 1, 1))

    out = jax.nn.relu(bn(conv(x_nchw, w1), g1, b1))
    out = bn(conv(out, w2), g2, b2)
    return jax.nn.relu(out + x_nchw)


if __name__ == "__main__":
    # BasicBlock(inplanes=4, planes=4, norm_type='batch', stride=1, downsample=None)
    N, C, H, W = 2, 4, 16, 16
    key = jax.random.PRNGKey(0)
    kx, k1, k2, k3, k4, k5, k6 = jax.random.split(key, 7)

    x = jax.random.normal(kx, (N, C, H, W), jnp.float32)
    w1 = 0.2 * jax.random.normal(k1, (C, C, 3, 3), jnp.float32)
    w2 = 0.2 * jax.random.normal(k2, (C, C, 3, 3), jnp.float32)
    g1 = 1.0 + 0.1 * jax.random.normal(k3, (C,), jnp.float32)
    b1 = 0.1 * jax.random.normal(k4, (C,), jnp.float32)
    g2 = 1.0 + 0.1 * jax.random.normal(k5, (C,), jnp.float32)
    b2 = 0.1 * jax.random.normal(k6, (C,), jnp.float32)
    params = (w1, g1, b1, w2, g2, b2)

    out = jax.block_until_ready(jax.jit(basic_block_forward)(x, params))
    ref = jax.block_until_ready(jax.jit(reference_forward)(x, params))

    tol = 2e-3 if HANDOFF_DTYPE == jnp.float32 else 3e-2
    assert out.shape == (N, C, H, W), out.shape
    np.testing.assert_allclose(np.asarray(out), np.asarray(ref),
                               rtol=tol, atol=tol)
    print("KERNEL_OK")
</pallas_src>

<mosaic_0001>
module attributes {stable_mosaic.version = 11 : i64} {
  func.func @_conv1_stats_kernel(%arg0: i32, %arg1: memref<2x16x64xf32, #tpu.memory_space<vmem>>, %arg2: memref<3x64x64xf32, #tpu.memory_space<vmem>>, %arg3: memref<64x4xf32, #tpu.memory_space<vmem>>, %arg4: memref<32x64xf32, #tpu.memory_space<vmem>>, %arg5: memref<1x4xf32, #tpu.memory_space<vmem>>, %arg6: memref<1x4xf32, #tpu.memory_space<vmem>>, %arg7: memref<2x18x64xf32, #tpu.memory_space<vmem>>) attributes {dimension_semantics = [#tpu.dimension_semantics<parallel>], iteration_bounds = array<i64: 1>, scalar_prefetch = 0 : i64, scratch_operands = 1 : i64, tpu.core_type = #tpu.core_type<tc>, window_params = [{transform_indices = @transform_0, window_bounds = array<i64: 2, 16, 64>}, {pipeline_mode = #tpu.pipeline_mode<synchronous>, transform_indices = @transform_1, window_bounds = array<i64: 3, 64, 64>}, {pipeline_mode = #tpu.pipeline_mode<synchronous>, transform_indices = @transform_2, window_bounds = array<i64: 64, 4>}, {transform_indices = @transform_3, window_bounds = array<i64: 32, 64>}, {transform_indices = @transform_4, window_bounds = array<i64: 1, 4>}, {transform_indices = @transform_5, window_bounds = array<i64: 1, 4>}]} {
    %c0 = arith.constant 0 : index
    %c0_0 = arith.constant 0 : index
    %c0_1 = arith.constant 0 : index
    %0 = vector.load %arg1[%c0, %c0_0, %c0_1] : memref<2x16x64xf32, #tpu.memory_space<vmem>>, vector<2x16x64xf32>
    %cst = arith.constant 0.000000e+00 : f32
    %1 = vector.broadcast %cst : f32 to vector<2x1x64xf32>
    %c0_2 = arith.constant 0 : index
    %c0_3 = arith.constant 0 : index
    %c0_4 = arith.constant 0 : index
    %2 = vector.load %arg7[%c0_2, %c0_3, %c0_4] : memref<2x18x64xf32, #tpu.memory_space<vmem>>, vector<2x1x64xf32>
    tpu.vector_store %arg7[%c0_2, %c0_3, %c0_4], %1 {strides = array<i32>} : memref<2x18x64xf32, #tpu.memory_space<vmem>>, vector<2x1x64xf32>,
    %cst_5 = arith.constant 0.000000e+00 : f32
    %3 = vector.broadcast %cst_5 : f32 to vector<2x1x64xf32>
    %c0_6 = arith.constant 0 : index
    %c17 = arith.constant 17 : index
    %c0_7 = arith.constant 0 : index
    %4 = vector.load %arg7[%c0_6, %c17, %c0_7] : memref<2x18x64xf32, #tpu.memory_space<vmem>>, vector<2x1x64xf32>
    tpu.vector_store %arg7[%c0_6, %c17, %c0_7], %3 {strides = array<i32>} : memref<2x18x64xf32, #tpu.memory_space<vmem>>, vector<2x1x64xf32>,
    %c0_8 = arith.constant 0 : index
    %c1 = arith.constant 1 : index
    %c0_9 = arith.constant 0 : index
    %5 = vector.load %arg7[%c0_8, %c1, %c0_9] : memref<2x18x64xf32, #tpu.memory_space<vmem>>, vector<2x16x64xf32>
    tpu.vector_store %arg7[%c0_8, %c1, %c0_9], %0 {strides = array<i32>} : memref<2x18x64xf32, #tpu.memory_space<vmem>>, vector<2x16x64xf32>,
    %cst_10 = arith.constant 0.000000e+00 : f32
    %6 = vector.broadcast %cst_10 : f32 to vector<32x64xf32>
    %c0_11 = arith.constant 0 : index
    %c0_12 = arith.constant 0 : index
    %c0_13 = arith.constant 0 : index
    %7 = vector.load %arg7[%c0_11, %c0_12, %c0_13] : memref<2x18x64xf32, #tpu.memory_space<vmem>>, vector<2x16x64xf32>
    %8 = vector.shape_cast %7 : vector<2x16x64xf32> to vector<32x64xf32>
    %c0_14 = arith.constant 0 : index
    %c0_15 = arith.constant 0 : index
    %c0_16 = arith.constant 0 : index
    %9 = vector.load %arg2[%c0_14, %c0_15, %c0_16] : memref<3x64x64xf32, #tpu.memory_space<vmem>>, vector<1x64x64xf32>
    %10 = vector.shape_cast %9 : vector<1x64x64xf32> to vector<64x64xf32>
    %cst_17 = arith.constant dense<0.000000e+00> : vector<32x64xf32>
    %11 = tpu.matmul %8, %10, %cst_17 {dimension_numbers = #tpu.dot_dimension_numbers<[1], [0], [0], [1], [0, 0, 1, 1], [], []>} : vector<32x64xf32>, vector<64x64xf32>, vector<32x64xf32> -> vector<32x64xf32>
    %12 = arith.addf %6, %11 : vector<32x64xf32>
    %c0_18 = arith.constant 0 : index
    %c1_19 = arith.constant 1 : index
    %c0_20 = arith.constant 0 : index
    %13 = vector.load %arg7[%c0_18, %c1_19, %c0_20] : memref<2x18x64xf32, #tpu.memory_space<vmem>>, vector<2x16x64xf32>
    %14 = vector.shape_cast %13 : vector<2x16x64xf32> to vector<32x64xf32>
    %c1_21 = arith.constant 1 : index
    %c0_22 = arith.constant 0 : index
    %c0_23 = arith.constant 0 : index
    %15 = vector.load %arg2[%c1_21, %c0_22, %c0_23] : memref<3x64x64xf32, #tpu.memory_space<vmem>>, vector<1x64x64xf32>
    %16 = vector.shape_cast %15 : vector<1x64x64xf32> to vector<64x64xf32>
    %cst_24 = arith.constant dense<0.000000e+00> : vector<32x64xf32>
    %17 = tpu.matmul %14, %16, %cst_24 {dimension_numbers = #tpu.dot_dimension_numbers<[1], [0], [0], [1], [0, 0, 1, 1], [], []>} : vector<32x64xf32>, vector<64x64xf32>, vector<32x64xf32> -> vector<32x64xf32>
    %18 = arith.addf %12, %17 : vector<32x64xf32>
    %c0_25 = arith.constant 0 : index
    %c2 = arith.constant 2 : index
    %c0_26 = arith.constant 0 : index
    %19 = vector.load %arg7[%c0_25, %c2, %c0_26] : memref<2x18x64xf32, #tpu.memory_space<vmem>>, vector<2x16x64xf32>
    %20 = vector.shape_cast %19 : vector<2x16x64xf32> to vector<32x64xf32>
    %c2_27 = arith.constant 2 : index
    %c0_28 = arith.constant 0 : index
    %c0_29 = arith.constant 0 : index
    %21 = vector.load %arg2[%c2_27, %c0_28, %c0_29] : memref<3x64x64xf32, #tpu.memory_space<vmem>>, vector<1x64x64xf32>
    %22 = vector.shape_cast %21 : vector<1x64x64xf32> to vector<64x64xf32>
    %cst_30 = arith.constant dense<0.000000e+00> : vector<32x64xf32>
    %23 = tpu.matmul %20, %22, %cst_30 {dimension_numbers = #tpu.dot_dimension_numbers<[1], [0], [0], [1], [0, 0, 1, 1], [], []>} : vector<32x64xf32>, vector<64x64xf32>, vector<32x64xf32> -> vector<32x64xf32>
    %24 = arith.addf %18, %23 : vector<32x64xf32>
    %c0_31 = arith.constant 0 : index
    %c0_32 = arith.constant 0 : index
    %25 = vector.load %arg3[%c0_31, %c0_32] : memref<64x4xf32, #tpu.memory_space<vmem>>, vector<64x4xf32>
    %cst_33 = arith.constant dense<0.000000e+00> : vector<32x4xf32>
    %26 = tpu.matmul %24, %25, %cst_33 {dimension_numbers = #tpu.dot_dimension_numbers<[1], [0], [0], [1], [0, 0, 1, 1], [], []>} : vector<32x64xf32>, vector<64x4xf32>, vector<32x4xf32> -> vector<32x4xf32>
    %cst_34 = arith.constant dense<0.000000e+00> : vector<4xf32>
    %27 = vector.multi_reduction <add>, %26, %cst_34 [0] : vector<32x4xf32> to vector<4xf32>
    %28 = vector.shape_cast %27 : vector<4xf32> to vector<1x4xf32>
    %29 = arith.mulf %24, %24 : vector<32x64xf32>
    %cst_35 = arith.constant dense<0.000000e+00> : vector<32x4xf32>
    %30 = tpu.matmul %29, %25, %cst_35 {dimension_numbers = #tpu.dot_dimension_numbers<[1], [0], [0], [1], [0, 0, 1, 1], [], []>} : vector<32x64xf32>, vector<64x4xf32>, vector<32x4xf32> -> vector<32x4xf32>
    %cst_36 = arith.constant dense<0.000000e+00> : vector<4xf32>
    %31 = vector.multi_reduction <add>, %30, %cst_36 [0] : vector<32x4xf32> to vector<4xf32>
    %32 = vector.shape_cast %31 : vector<4xf32> to vector<1x4xf32>
    %c0_37 = arith.constant 0 : index
    %c0_38 = arith.constant 0 : index
    %33 = vector.load %arg4[%c0_37, %c0_38] : memref<32x64xf32, #tpu.memory_space<vmem>>, vector<32x64xf32>
    tpu.vector_store %arg4[%c0_37, %c0_38], %24 {strides = array<i32>} : memref<32x64xf32, #tpu.memory_space<vmem>>, vector<32x64xf32>,
    %c0_39 = arith.constant 0 : index
    %c0_40 = arith.constant 0 : index
    %34 = vector.load %arg5[%c0_39, %c0_40] : memref<1x4xf32, #tpu.memory_space<vmem>>, vector<1x4xf32>
    tpu.vector_store %arg5[%c0_39, %c0_40], %28 {strides = array<i32>} : memref<1x4xf32, #tpu.memory_space<vmem>>, vector<1x4xf32>,
    %c0_41 = arith.constant 0 : index
    %c0_42 = arith.constant 0 : index
    %35 = vector.load %arg6[%c0_41, %c0_42] : memref<1x4xf32, #tpu.memory_space<vmem>>, vector<1x4xf32>
    tpu.vector_store %arg6[%c0_41, %c0_42], %32 {strides = array<i32>} : memref<1x4xf32, #tpu.memory_space<vmem>>, vector<1x4xf32>,
    return
  }
  func.func @transform_0(%arg0: i32) -> (i32, i32, i32) {
    %c0_i32 = arith.constant 0 : i32
    %c0_i32_0 = arith.constant 0 : i32
    %c0_i32_1 = arith.constant 0 : i32
    return %arg0, %c0_i32, %c0_i32_0 : i32, i32, i32
  }
  func.func @transform_1(%arg0: i32) -> (i32, i32, i32) {
    %c0_i32 = arith.constant 0 : i32
    %c0_i32_0 = arith.constant 0 : i32
    %c0_i32_1 = arith.constant 0 : i32
    %c0_i32_2 = arith.constant 0 : i32
    return %c0_i32, %c0_i32_0, %c0_i32_1 : i32, i32, i32
  }
  func.func @transform_2(%arg0: i32) -> (i32, i32) {
    %c0_i32 = arith.constant 0 : i32
    %c0_i32_0 = arith.constant 0 : i32
    %c0_i32_1 = arith.constant 0 : i32
    return %c0_i32, %c0_i32_0 : i32, i32
  }
  func.func @transform_3(%arg0: i32) -> (i32, i32) {
    %c0_i32 = arith.constant 0 : i32
    %c0_i32_0 = arith.constant 0 : i32
    return %arg0, %c0_i32 : i32, i32
  }
  func.func @transform_4(%arg0: i32) -> (i32, i32) {
    %c0_i32 = arith.constant 0 : i32
    %c0_i32_0 = arith.constant 0 : i32
    return %arg0, %c0_i32 : i32, i32
  }
  func.func @transform_5(%arg0: i32) -> (i32, i32) {
    %c0_i32 = arith.constant 0 : i32
    %c0_i32_0 = arith.constant 0 : i32
    return %arg0, %c0_i32 : i32, i32
  }
}

module attributes {stable_mosaic.version = 11 : i64} {
  func.func @_bn1_relu_conv2_stats_kernel(%arg0: i32, %arg1: memref<32x64xf32, #tpu.memory_space<vmem>>, %arg2: memref<1x64xf32, #tpu.memory_space<vmem>>, %arg3: memref<1x64xf32, #tpu.memory_space<vmem>>, %arg4: memref<3x64x64xf32, #tpu.memory_space<vmem>>, %arg5: memref<64x4xf32, #tpu.memory_space<vmem>>, %arg6: memref<32x64xf32, #tpu.memory_space<vmem>>, %arg7: memref<1x4xf32, #tpu.memory_space<vmem>>, %arg8: memref<1x4xf32, #tpu.memory_space<vmem>>, %arg9: memref<2x18x64xf32, #tpu.memory_space<vmem>>) attributes {dimension_semantics = [#tpu.dimension_semantics<parallel>], iteration_bounds = array<i64: 1>, scalar_prefetch = 0 : i64, scratch_operands = 1 : i64, tpu.core_type = #tpu.core_type<tc>, window_params = [{transform_indices = @transform_0, window_bounds = array<i64: 32, 64>}, {pipeline_mode = #tpu.pipeline_mode<synchronous>, transform_indices = @transform_1, window_bounds = array<i64: 1, 64>}, {pipeline_mode = #tpu.pipeline_mode<synchronous>, transform_indices = @transform_2, window_bounds = array<i64: 1, 64>}, {pipeline_mode = #tpu.pipeline_mode<synchronous>, transform_indices = @transform_3, window_bounds = array<i64: 3, 64, 64>}, {pipeline_mode = #tpu.pipeline_mode<synchronous>, transform_indices = @transform_4, window_bounds = array<i64: 64, 4>}, {transform_indices = @transform_5, window_bounds = array<i64: 32, 64>}, {transform_indices = @transform_6, window_bounds = array<i64: 1, 4>}, {transform_indices = @transform_7, window_bounds = array<i64: 1, 4>}]} {
    %c0 = arith.constant 0 : index
    %c0_0 = arith.constant 0 : index
    %0 = vector.load %arg1[%c0, %c0_0] : memref<32x64xf32, #tpu.memory_space<vmem>>, vector<32x64xf32>
    %c0_1 = arith.constant 0 : index
    %c0_2 = arith.constant 0 : index
    %1 = vector.load %arg2[%c0_1, %c0_2] : memref<1x64xf32, #tpu.memory_space<vmem>>, vector<1x64xf32>
    %2 = vector.broadcast %1 : vector<1x64xf32> to vector<32x64xf32>
    %3 = arith.mulf %0, %2 : vector<32x64xf32>
    %c0_3 = arith.constant 0 : index
    %c0_4 = arith.constant 0 : index
    %4 = vector.load %arg3[%c0_3, %c0_4] : memref<1x64xf32, #tpu.memory_space<vmem>>, vector<1x64xf32>
    %5 = vector.broadcast %4 : vector<1x64xf32> to vector<32x64xf32>
    %6 = arith.addf %3, %5 : vector<32x64xf32>
    %cst = arith.constant 0.000000e+00 : f32
    %7 = vector.broadcast %cst : f32 to vector<32x64xf32>
    %8 = arith.maximumf %6, %7 : vector<32x64xf32>
    %9 = vector.shape_cast %8 : vector<32x64xf32> to vector<2x16x64xf32>
    %cst_5 = arith.constant 0.000000e+00 : f32
    %10 = vector.broadcast %cst_5 : f32 to vector<2x1x64xf32>
    %c0_6 = arith.constant 0 : index
    %c0_7 = arith.constant 0 : index
    %c0_8 = arith.constant 0 : index
    %11 = vector.load %arg9[%c0_6, %c0_7, %c0_8] : memref<2x18x64xf32, #tpu.memory_space<vmem>>, vector<2x1x64xf32>
    tpu.vector_store %arg9[%c0_6, %c0_7, %c0_8], %10 {strides = array<i32>} : memref<2x18x64xf32, #tpu.memory_space<vmem>>, vector<2x1x64xf32>,
    %cst_9 = arith.constant 0.000000e+00 : f32
    %12 = vector.broadcast %cst_9 : f32 to vector<2x1x64xf32>
    %c0_10 = arith.constant 0 : index
    %c17 = arith.constant 17 : index
    %c0_11 = arith.constant 0 : index
    %13 = vector.load %arg9[%c0_10, %c17, %c0_11] : memref<2x18x64xf32, #tpu.memory_space<vmem>>, vector<2x1x64xf32>
    tpu.vector_store %arg9[%c0_10, %c17, %c0_11], %12 {strides = array<i32>} : memref<2x18x64xf32, #tpu.memory_space<vmem>>, vector<2x1x64xf32>,
    %c0_12 = arith.constant 0 : index
    %c1 = arith.constant 1 : index
    %c0_13 = arith.constant 0 : index
    %14 = vector.load %arg9[%c0_12, %c1, %c0_13] : memref<2x18x64xf32, #tpu.memory_space<vmem>>, vector<2x16x64xf32>
    tpu.vector_store %arg9[%c0_12, %c1, %c0_13], %9 {strides = array<i32>} : memref<2x18x64xf32, #tpu.memory_space<vmem>>, vector<2x16x64xf32>,
    %cst_14 = arith.constant 0.000000e+00 : f32
    %15 = vector.broadcast %cst_14 : f32 to vector<32x64xf32>
    %c0_15 = arith.constant 0 : index
    %c0_16 = arith.constant 0 : index
    %c0_17 = arith.constant 0 : index
    %16 = vector.load %arg9[%c0_15, %c0_16, %c0_17] : memref<2x18x64xf32, #tpu.memory_space<vmem>>, vector<2x16x64xf32>
    %17 = vector.shape_cast %16 : vector<2x16x64xf32> to vector<32x64xf32>
    %c0_18 = arith.constant 0 : index
    %c0_19 = arith.constant 0 : index
    %c0_20 = arith.constant 0 : index
    %18 = vector.load %arg4[%c0_18, %c0_19, %c0_20] : memref<3x64x64xf32, #tpu.memory_space<vmem>>, vector<1x64x64xf32>
    %19 = vector.shape_cast %18 : vector<1x64x64xf32> to vector<64x64xf32>
    %cst_21 = arith.constant dense<0.000000e+00> : vector<32x64xf32>
    %20 = tpu.matmul %17, %19, %cst_21 {dimension_numbers = #tpu.dot_dimension_numbers<[1], [0], [0], [1], [0, 0, 1, 1], [], []>} : vector<32x64xf32>, vector<64x64xf32>, vector<32x64xf32> -> vector<32x64xf32>
    %21 = arith.addf %15, %20 : vector<32x64xf32>
    %c0_22 = arith.constant 0 : index
    %c1_23 = arith.constant 1 : index
    %c0_24 = arith.constant 0 : index
    %22 = vector.load %arg9[%c0_22, %c1_23, %c0_24] : memref<2x18x64xf32, #tpu.memory_space<vmem>>, vector<2x16x64xf32>
    %23 = vector.shape_cast %22 : vector<2x16x64xf32> to vector<32x64xf32>
    %c1_25 = arith.constant 1 : index
    %c0_26 = arith.constant 0 : index
    %c0_27 = arith.constant 0 : index
    %24 = vector.load %arg4[%c1_25, %c0_26, %c0_27] : memref<3x64x64xf32, #tpu.memory_space<vmem>>, vector<1x64x64xf32>
    %25 = vector.shape_cast %24 : vector<1x64x64xf32> to vector<64x64xf32>
    %cst_28 = arith.constant dense<0.000000e+00> : vector<32x64xf32>
    %26 = tpu.matmul %23, %25, %cst_28 {dimension_numbers = #tpu.dot_dimension_numbers<[1], [0], [0], [1], [0, 0, 1, 1], [], []>} : vector<32x64xf32>, vector<64x64xf32>, vector<32x64xf32> -> vector<32x64xf32>
    %27 = arith.addf %21, %26 : vector<32x64xf32>
    %c0_29 = arith.constant 0 : index
    %c2 = arith.constant 2 : index
    %c0_30 = arith.constant 0 : index
    %28 = vector.load %arg9[%c0_29, %c2, %c0_30] : memref<2x18x64xf32, #tpu.memory_space<vmem>>, vector<2x16x64xf32>
    %29 = vector.shape_cast %28 : vector<2x16x64xf32> to vector<32x64xf32>
    %c2_31 = arith.constant 2 : index
    %c0_32 = arith.constant 0 : index
    %c0_33 = arith.constant 0 : index
    %30 = vector.load %arg4[%c2_31, %c0_32, %c0_33] : memref<3x64x64xf32, #tpu.memory_space<vmem>>, vector<1x64x64xf32>
    %31 = vector.shape_cast %30 : vector<1x64x64xf32> to vector<64x64xf32>
    %cst_34 = arith.constant dense<0.000000e+00> : vector<32x64xf32>
    %32 = tpu.matmul %29, %31, %cst_34 {dimension_numbers = #tpu.dot_dimension_numbers<[1], [0], [0], [1], [0, 0, 1, 1], [], []>} : vector<32x64xf32>, vector<64x64xf32>, vector<32x64xf32> -> vector<32x64xf32>
    %33 = arith.addf %27, %32 : vector<32x64xf32>
    %c0_35 = arith.constant 0 : index
    %c0_36 = arith.constant 0 : index
    %34 = vector.load %arg5[%c0_35, %c0_36] : memref<64x4xf32, #tpu.memory_space<vmem>>, vector<64x4xf32>
    %cst_37 = arith.constant dense<0.000000e+00> : vector<32x4xf32>
    %35 = tpu.matmul %33, %34, %cst_37 {dimension_numbers = #tpu.dot_dimension_numbers<[1], [0], [0], [1], [0, 0, 1, 1], [], []>} : vector<32x64xf32>, vector<64x4xf32>, vector<32x4xf32> -> vector<32x4xf32>
    %cst_38 = arith.constant dense<0.000000e+00> : vector<4xf32>
    %36 = vector.multi_reduction <add>, %35, %cst_38 [0] : vector<32x4xf32> to vector<4xf32>
    %37 = vector.shape_cast %36 : vector<4xf32> to vector<1x4xf32>
    %38 = arith.mulf %33, %33 : vector<32x64xf32>
    %cst_39 = arith.constant dense<0.000000e+00> : vector<32x4xf32>
    %39 = tpu.matmul %38, %34, %cst_39 {dimension_numbers = #tpu.dot_dimension_numbers<[1], [0], [0], [1], [0, 0, 1, 1], [], []>} : vector<32x64xf32>, vector<64x4xf32>, vector<32x4xf32> -> vector<32x4xf32>
    %cst_40 = arith.constant dense<0.000000e+00> : vector<4xf32>
    %40 = vector.multi_reduction <add>, %39, %cst_40 [0] : vector<32x4xf32> to vector<4xf32>
    %41 = vector.shape_cast %40 : vector<4xf32> to vector<1x4xf32>
    %c0_41 = arith.constant 0 : index
    %c0_42 = arith.constant 0 : index
    %42 = vector.load %arg6[%c0_41, %c0_42] : memref<32x64xf32, #tpu.memory_space<vmem>>, vector<32x64xf32>
    tpu.vector_store %arg6[%c0_41, %c0_42], %33 {strides = array<i32>} : memref<32x64xf32, #tpu.memory_space<vmem>>, vector<32x64xf32>,
    %c0_43 = arith.constant 0 : index
    %c0_44 = arith.constant 0 : index
    %43 = vector.load %arg7[%c0_43, %c0_44] : memref<1x4xf32, #tpu.memory_space<vmem>>, vector<1x4xf32>
    tpu.vector_store %arg7[%c0_43, %c0_44], %37 {strides = array<i32>} : memref<1x4xf32, #tpu.memory_space<vmem>>, vector<1x4xf32>,
    %c0_45 = arith.constant 0 : index
    %c0_46 = arith.constant 0 : index
    %44 = vector.load %arg8[%c0_45, %c0_46] : memref<1x4xf32, #tpu.memory_space<vmem>>, vector<1x4xf32>
    tpu.vector_store %arg8[%c0_45, %c0_46], %41 {strides = array<i32>} : memref<1x4xf32, #tpu.memory_space<vmem>>, vector<1x4xf32>,
    return
  }
  func.func @transform_0(%arg0: i32) -> (i32, i32) {
    %c0_i32 = arith.constant 0 : i32
    %c0_i32_0 = arith.constant 0 : i32
    return %arg0, %c0_i32 : i32, i32
  }
  func.func @transform_1(%arg0: i32) -> (i32, i32) {
    %c0_i32 = arith.constant 0 : i32
    %c0_i32_0 = arith.constant 0 : i32
    %c0_i32_1 = arith.constant 0 : i32
    return %c0_i32, %c0_i32_0 : i32, i32
  }
  func.func @transform_2(%arg0: i32) -> (i32, i32) {
    %c0_i32 = arith.constant 0 : i32
    %c0_i32_0 = arith.constant 0 : i32
    %c0_i32_1 = arith.constant 0 : i32
    return %c0_i32, %c0_i32_0 : i32, i32
  }
  func.func @transform_3(%arg0: i32) -> (i32, i32, i32) {
    %c0_i32 = arith.constant 0 : i32
    %c0_i32_0 = arith.constant 0 : i32
    %c0_i32_1 = arith.constant 0 : i32
    %c0_i32_2 = arith.constant 0 : i32
    return %c0_i32, %c0_i32_0, %c0_i32_1 : i32, i32, i32
  }
  func.func @transform_4(%arg0: i32) -> (i32, i32) {
    %c0_i32 = arith.constant 0 : i32
    %c0_i32_0 = arith.constant 0 : i32
    %c0_i32_1 = arith.constant 0 : i32
    return %c0_i32, %c0_i32_0 : i32, i32
  }
  func.func @transform_5(%arg0: i32) -> (i32, i32) {
    %c0_i32 = arith.constant 0 : i32
    %c0_i32_0 = arith.constant 0 : i32
    return %arg0, %c0_i32 : i32, i32
  }
  func.func @transform_6(%arg0: i32) -> (i32, i32) {
    %c0_i32 = arith.constant 0 : i32
    %c0_i32_0 = arith.constant 0 : i32
    return %arg0, %c0_i32 : i32, i32
  }
  func.func @transform_7(%arg0: i32) -> (i32, i32) {
    %c0_i32 = arith.constant 0 : i32
    %c0_i32_0 = arith.constant 0 : i32
    return %arg0, %c0_i32 : i32, i32
  }
}

module attributes {stable_mosaic.version = 11 : i64} {
  func.func @_bn2_add_relu_kernel(%arg0: i32, %arg1: memref<32x64xf32, #tpu.memory_space<vmem>>, %arg2: memref<32x64xf32, #tpu.memory_space<vmem>>, %arg3: memref<1x64xf32, #tpu.memory_space<vmem>>, %arg4: memref<1x64xf32, #tpu.memory_space<vmem>>, %arg5: memref<32x64xf32, #tpu.memory_space<vmem>>) attributes {dimension_semantics = [#tpu.dimension_semantics<parallel>], iteration_bounds = array<i64: 1>, scalar_prefetch = 0 : i64, scratch_operands = 0 : i64, tpu.core_type = #tpu.core_type<tc>, window_params = [{pipeline_mode = #tpu.pipeline_mode<synchronous>, transform_indices = @transform_0, window_bounds = array<i64: 32, 64>}, {pipeline_mode = #tpu.pipeline_mode<synchronous>, transform_indices = @transform_1, window_bounds = array<i64: 32, 64>}, {pipeline_mode = #tpu.pipeline_mode<synchronous>, transform_indices = @transform_2, window_bounds = array<i64: 1, 64>}, {pipeline_mode = #tpu.pipeline_mode<synchronous>, transform_indices = @transform_3, window_bounds = array<i64: 1, 64>}, {pipeline_mode = #tpu.pipeline_mode<synchronous>, transform_indices = @transform_4, window_bounds = array<i64: 32, 64>}]} {
    %c0 = arith.constant 0 : index
    %c0_0 = arith.constant 0 : index
    %0 = vector.load %arg1[%c0, %c0_0] : memref<32x64xf32, #tpu.memory_space<vmem>>, vector<32x64xf32>
    %c0_1 = arith.constant 0 : index
    %c0_2 = arith.constant 0 : index
    %1 = vector.load %arg3[%c0_1, %c0_2] : memref<1x64xf32, #tpu.memory_space<vmem>>, vector<1x64xf32>
    %2 = vector.broadcast %1 : vector<1x64xf32> to vector<32x64xf32>
    %3 = arith.mulf %0, %2 : vector<32x64xf32>
    %c0_3 = arith.constant 0 : index
    %c0_4 = arith.constant 0 : index
    %4 = vector.load %arg4[%c0_3, %c0_4] : memref<1x64xf32, #tpu.memory_space<vmem>>, vector<1x64xf32>
    %5 = vector.broadcast %4 : vector<1x64xf32> to vector<32x64xf32>
    %6 = arith.addf %3, %5 : vector<32x64xf32>
    %c0_5 = arith.constant 0 : index
    %c0_6 = arith.constant 0 : index
    %7 = vector.load %arg2[%c0_5, %c0_6] : memref<32x64xf32, #tpu.memory_space<vmem>>, vector<32x64xf32>
    %8 = arith.addf %6, %7 : vector<32x64xf32>
    %cst = arith.constant 0.000000e+00 : f32
    %9 = vector.broadcast %cst : f32 to vector<32x64xf32>
    %10 = arith.maximumf %8, %9 : vector<32x64xf32>
    %c0_7 = arith.constant 0 : index
    %c0_8 = arith.constant 0 : index
    %11 = vector.load %arg5[%c0_7, %c0_8] : memref<32x64xf32, #tpu.memory_space<vmem>>, vector<32x64xf32>
    tpu.vector_store %arg5[%c0_7, %c0_8], %10 {strides = array<i32>} : memref<32x64xf32, #tpu.memory_space<vmem>>, vector<32x64xf32>,
    return
  }
  func.func @transform_0(%arg0: i32) -> (i32, i32) {
    %c0_i32 = arith.constant 0 : i32
    %c0_i32_0 = arith.constant 0 : i32
    %c0_i32_1 = arith.constant 0 : i32
    return %c0_i32, %c0_i32_0 : i32, i32
  }
  func.func @transform_1(%arg0: i32) -> (i32, i32) {
    %c0_i32 = arith.constant 0 : i32
    %c0_i32_0 = arith.constant 0 : i32
    %c0_i32_1 = arith.constant 0 : i32
    return %c0_i32, %c0_i32_0 : i32, i32
  }
  func.func @transform_2(%arg0: i32) -> (i32, i32) {
    %c0_i32 = arith.constant 0 : i32
    %c0_i32_0 = arith.constant 0 : i32
    %c0_i32_1 = arith.constant 0 : i32
    return %c0_i32, %c0_i32_0 : i32, i32
  }
  func.func @transform_3(%arg0: i32) -> (i32, i32) {
    %c0_i32 = arith.constant 0 : i32
    %c0_i32_0 = arith.constant 0 : i32
    %c0_i32_1 = arith.constant 0 : i32
    return %c0_i32, %c0_i32_0 : i32, i32
  }
  func.func @transform_4(%arg0: i32) -> (i32, i32) {
    %c0_i32 = arith.constant 0 : i32
    %c0_i32_0 = arith.constant 0 : i32
    %c0_i32_1 = arith.constant 0 : i32
    return %c0_i32, %c0_i32_0 : i32, i32
  }
}

</mosaic_0001>

<bundles_post_ra>
// kernel: tile.33
= control target key start
LH: loop header
LB: loop body
LE: loop exit
PB: predicated region body
PF: predicated region fallthrough
CT: control target
= control target key end

     0   :  { %s28_s0 = inlined_call_operand.vmem [shape: f32[4], index: 0, kind: input, shape index: {}]   ;;  %s29_s1 = inlined_call_operand.vmem [shape: f32[16,4], index: 1, kind: output, shape index: {}]  }
   0x1   :  { %v4_v0 = vld [vmem:[%s28_s0] ss:$0 sm:$0xff] }
   0x2   :  { %5 = vst [vmem:[%s29_s1] sm:$0xff] %v4_v0 }
   0x3   :  { %8 = vst [vmem:[%s29_s1 + $0x8] sm:$0xff] %v4_v0 }

// kernel: tile.34
= control target key start
LH: loop header
LB: loop body
LE: loop exit
PB: predicated region body
PF: predicated region fallthrough
CT: control target
= control target key end

     0   :  { %s131_s10 = smov 60   ;;  %s132_s11 = smov 52   ;;  %vm3_vm0 = vcmask 31744   ;;  %vm9_vm1 = vcmask 523744   ;;  %vm15_vm2 = vcmask 490944   ;;  %vm21_vm3 = vcmask 458144   ;;  %s207_s0 = inlined_call_operand.vmem [shape: f32[16,4], index: 0, kind: input, shape index: {}]   ;;  %s208_s1 = inlined_call_operand.vmem [shape: f32[1,64], index: 1, kind: output, shape index: {}]  }
   0x1   :  { %v101_v0 = vld [vmem:[%s207_s0 + $0xf] sm:$0x1]   ;;  %v103_v1 = vld [vmem:[%s207_s0 + $0xd] sm:$0x1]   ;;  %v105_v2 = vld [vmem:[%s207_s0 + $0xb] sm:$0x1]  }
   0x2   :  { %7 = vrot.lane.b32.xlu0 %v101_v0, %s131_s10  ;;  %19 = vrot.lane.b32.xlu1 %v103_v1, %s132_s11  ;;  %s133_s14 = smov 44   ;;  %v102_v3 = vld [vmem:[%s207_s0 + $0xe] sm:$0x1]   ;;  %v104_v4 = vld [vmem:[%s207_s0 + $0xc] sm:$0x1]   ;;  %s134_s19 = smov 56  }
   0x3   :  { %31 = vrot.lane.b32.xlu2 %v105_v2, %s133_s14  ;;  %s135_s20 = smov 48   ;;  %v106_v5 = vld [vmem:[%s207_s0 + $0xa] sm:$0x1]   ;;  %s136_s23 = smov 40   ;;  %v107_v6 = vld [vmem:[%s207_s0 + $0x9] sm:$0x1]  }
   0x4   :  { %v108_v7 = vld [vmem:[%s207_s0 + $0x8] sm:$0x1]   ;;  %s137_s28 = smov 36   ;;  %s138_s29 = smov 32   ;;  %v109_v8 = vld [vmem:[%s207_s0 + $0x7] sm:$0x1]  }
   0x5   :  { %s139_s3 = smov 28   ;;  %v110_v9 = vld [vmem:[%s207_s0 + $0x6] sm:$0x1]   ;;  %v111_v10 = vld [vmem:[%s207_s0 + $0x5] sm:$0x1]   ;;  %s140_s8 = smov 24  }
   0x6   :  { %s141_s9 = smov 20   ;;  %v112_v11 = vld [vmem:[%s207_s0 + $0x4] sm:$0x1]   ;;  %s142_s12 = smov 16   ;;  %v113_v12 = vld [vmem:[%s207_s0 + $0x3] sm:$0x1]  }
   0x7   :  { %v114_v13 = vld [vmem:[%s207_s0 + $0x2] sm:$0x1]   ;;  %s143_s17 = smov 12   ;;  %s144_s18 = smov 8   ;;  %v115_v14 = vld [vmem:[%s207_s0 + $0x1] sm:$0x1]  }
   0x8   :  { %s145_s21 = smov 4   ;;  %v2_v15 = vld [vmem:[%s207_s0] sm:$0x1]   ;;  %vm27_vm4 = vcmask 425344   ;;  %vm33_vm5 = vcmask 392544   ;;  %vm39_vm6 = vcmask 359744  }
   0x9   :  { %4 = vst.msk [vmem:[#allocation0] sm:$0x1] %vm3_vm0, %v2_v15   ;;  %vm45_vm7 = vcmask 326944   ;;  %vm51_vm8 = vcmask 294144   ;;  %vm57_vm9 = vcmask 261344   ;;  %vm63_vm10 = vcmask 228544  }
   0xa   :  { %13 = vrot.lane.b32.xlu0 %v102_v3, %s134_s19  ;;  %25 = vrot.lane.b32.xlu1 %v104_v4, %s135_s20  ;;  %vm69_vm11 = vcmask 195744   ;;  %vm75_vm12 = vcmask 162944   ;;  %vm81_vm13 = vcmask 130144   ;;  %vm87_vm14 = vcmask 97344  }
   0xb   :  { %37 = vrot.lane.b32.xlu2 %v106_v5, %s136_s23  ;;  %vm93_vm15 = vcmask 64544  }
  0x12   :  { %43 = vrot.lane.b32.xlu0 %v107_v6, %s137_s28  ;;  %49 = vrot.lane.b32.xlu1 %v108_v7, %s138_s29 }
  0x13   :  { %55 = vrot.lane.b32.xlu2 %v109_v8, %s139_s3 }
  0x1a   :  { %61 = vrot.lane.b32.xlu0 %v110_v9, %s140_s8  ;;  %67 = vrot.lane.b32.xlu1 %v111_v10, %s141_s9 }
  0x1b   :  { %73 = vrot.lane.b32.xlu2 %v112_v11, %s142_s12 }
  0x22   :  { %79 = vrot.lane.b32.xlu0 %v113_v12, %s143_s17  ;;  %85 = vrot.lane.b32.xlu1 %v114_v13, %s144_s18 }
  0x23   :  { %91 = vrot.lane.b32.xlu2 %v115_v14, %s145_s21 }
  0x5d   :  { %v32_v16 = vpop.permute.xlu2 %31  }
  0x65   :  { %v38_v17 = vpop.permute.xlu2 %37  }
  0x6d   :  { %v56_v18 = vpop.permute.xlu2 %55  }
  0x74   :  { %v8_v19 = vpop.permute.xlu0 %7   ;;  %v20_v20 = vpop.permute.xlu1 %19  }
  0x75   :  { %10 = vst.msk [vmem:[#allocation0] sm:$0x1] %vm9_vm1, %v8_v19   ;;  %v74_v21 = vpop.permute.xlu2 %73  }
  0x7c   :  { %v14_v22 = vpop.permute.xlu0 %13   ;;  %v26_v23 = vpop.permute.xlu1 %25  }
  0x7d   :  { %16 = vst.msk [vmem:[#allocation0] sm:$0x1] %vm15_vm2, %v14_v22   ;;  %v92_v24 = vpop.permute.xlu2 %91  }
  0x7e   :  { %22 = vst.msk [vmem:[#allocation0] sm:$0x1] %vm21_vm3, %v20_v20  }
  0x7f   :  { %28 = vst.msk [vmem:[#allocation0] sm:$0x1] %vm27_vm4, %v26_v23  }
  0x80   :  { %34 = vst.msk [vmem:[#allocation0] sm:$0x1] %vm33_vm5, %v32_v16  }
  0x81   :  { %40 = vst.msk [vmem:[#allocation0] sm:$0x1] %vm39_vm6, %v38_v17  }
  0x84   :  { %v44_v25 = vpop.permute.xlu0 %43   ;;  %v50_v26 = vpop.permute.xlu1 %49  }
  0x85   :  { %46 = vst.msk [vmem:[#allocation0] sm:$0x1] %vm45_vm7, %v44_v25  }
  0x86   :  { %52 = vst.msk [vmem:[#allocation0] sm:$0x1] %vm51_vm8, %v50_v26  }
  0x87   :  { %58 = vst.msk [vmem:[#allocation0] sm:$0x1] %vm57_vm9, %v56_v18  }
  0x8c   :  { %v62_v27 = vpop.permute.xlu0 %61   ;;  %v68_v28 = vpop.permute.xlu1 %67  }
  0x8d   :  { %64 = vst.msk [vmem:[#allocation0] sm:$0x1] %vm63_vm10, %v62_v27  }
  0x8e   :  { %70 = vst.msk [vmem:[#allocation0] sm:$0x1] %vm69_vm11, %v68_v28  }
  0x8f   :  { %76 = vst.msk [vmem:[#allocation0] sm:$0x1] %vm75_vm12, %v74_v21  }
  0x94   :  { %v80_v29 = vpop.permute.xlu0 %79   ;;  %v86_v30 = vpop.permute.xlu1 %85  }
  0x95   :  { %82 = vst.msk [vmem:[#allocation0] sm:$0x1] %vm81_vm13, %v80_v29  }
  0x96   :  { %88 = vst.msk [vmem:[#allocation0] sm:$0x1] %vm87_vm14, %v86_v30  }
  0x97   :  { %94 = vst.msk [vmem:[#allocation0] sm:$0x1] %vm93_vm15, %v92_v24  }
  0x9e   :  { %v97_v31 = vld [vmem:[#allocation0] sm:$0x1] }
  0x9f   :  { %100 = vst [vmem:[%s208_s1] sm:$0x1] %v97_v31 }

// kernel: basic_block_forward.4
= control target key start
LH: loop header
LB: loop body
LE: loop exit
PB: predicated region body
PF: predicated region fallthrough
CT: control target
= control target key end

     0   :  { %vm47_vm0 = vcmask 516096   ;;  %v417_v2 = vmov 0.0   ;;  %vm52_vm1 = vcmask 523264   ;;  %vm271_vm2 = vcmask 31744   ;;  %s630_s3 = inlined_call_operand.vmem [shape: f32[3,64,64], index: 3, kind: input, shape index: {}]   ;;  %s631_s0 = inlined_call_operand.vmem [shape: f32[32,64], index: 0, kind: input, shape index: {}]   ;;  %s632_s1 = inlined_call_operand.vmem [shape: f32[1,64], index: 1, kind: input, shape index: {}]   ;;  %s633_s2 = inlined_call_operand.vmem [shape: f32[1,64], index: 2, kind: input, shape index: {}]   ;;  %s634_s4 = inlined_call_operand.vmem [shape: f32[64,4], index: 4, kind: input, shape index: {}]   ;;  %s635_s5 = inlined_call_operand.vmem [shape: f32[32,64], index: 5, kind: output, shape index: {0}]   ;;  %s636_s6 = inlined_call_operand.vmem [shape: f32[1,4], index: 6, kind: output, shape index: {1}]   ;;  %s637_s7 = inlined_call_operand.vmem [shape: f32[1,4], index: 7, kind: output, shape index: {2}]  }
   0x1   :  { %v369_v0 = vld [vmem:[%s630_s3 + $0x78] sm:$0xff]  ;;  %v368_v1 = vld [vmem:[%s630_s3 + $0x70] sm:$0xff]  ;;  %48 = vst.msk [vmem:[#allocation2] sm:$0x1] %vm47_vm0, %v417_v2  ;;  %v367_v3 = vld [vmem:[%s630_s3 + $0x68] sm:$0xff]  ;;  %vm347_vm3 = vcmask 24576  }
   0x2   :  { %398 = vmatpush.msra.mxu1 %v369_v0  ;;  %102 = vmatpush.msra.mxu0 %v369_v0  ;;  %49 = vst.msk [vmem:[#allocation2 + $0x18] sm:$0x1] %vm47_vm0, %v417_v2  ;;  %v366_v4 = vld [vmem:[%s630_s3 + $0x60] sm:$0xff]  ;;  %v385_v5 = vld [vmem:[%s630_s3 + $0xb8] sm:$0xff]  ;;  %v384_v6 = vld [vmem:[%s630_s3 + $0xb0] sm:$0xff] }
   0x3   :  { %50 = vst.msk [vmem:[#allocation2 + $0x11] sm:$0x1] %vm47_vm0, %v417_v2  ;;  %197 = vmatpush.msra.mxu2 %v385_v5  ;;  %v25_v7 = vld [vmem:[%s631_s0 + $0x10] sm:$0xff]  ;;  %v415_v8 = vld [vmem:[%s632_s1] ss:$0 sm:$0xff]  ;;  %v383_v10 = vld [vmem:[%s630_s3 + $0xa8] sm:$0xff] }
   0x4   :  { %399 = vmatpush.msra.mxu1 %v368_v1  ;;  %51 = vst.msk [vmem:[#allocation2 + $0x29] sm:$0x1] %vm47_vm0, %v417_v2  ;;  %v416_v9 = vld [vmem:[%s633_s2] ss:$0 sm:$0xff]  ;;  %103 = vmatpush.msra.mxu0 %v368_v1  ;;  %v365_v11 = vld [vmem:[%s630_s3 + $0x58] sm:$0xff]  ;;  %v33_v12 = vmul.f32 %v415_v8, %v25_v7  ;;  %v364_v15 = vld [vmem:[%s630_s3 + $0x50] sm:$0xff] }
   0x5   :  { %198 = vmatpush.msra.mxu2 %v384_v6  ;;  %v382_v13 = vld [vmem:[%s630_s3 + $0xa0] sm:$0xff]  ;;  %v26_v14 = vld [vmem:[%s631_s0 + $0x18] sm:$0xff]  ;;  %v363_v20 = vld [vmem:[%s630_s3 + $0x48] sm:$0xff] }
   0x6   :  { %400 = vmatpush.msra.mxu1 %v367_v3  ;;  %104 = vmatpush.msra.mxu0 %v367_v3  ;;  %v41_v16 = vadd.f32 %v416_v9, %v33_v12  ;;  %v381_v17 = vld [vmem:[%s630_s3 + $0x98] sm:$0xff]  ;;  %v34_v18 = vmul.f32 %v415_v8, %v26_v14  ;;  %v23_v19 = vld [vmem:[%s631_s0] sm:$0xff]  ;;  %v380_v22 = vld [vmem:[%s630_s3 + $0x90] sm:$0xff] }
   0x7   :  { %199 = vmatpush.msra.mxu2 %v383_v10  ;;  %v24_v24 = vld [vmem:[%s631_s0 + $0x8] sm:$0xff]  ;;  %v31_v25 = vmul.f32 %v415_v8, %v23_v19  ;;  %v362_v27 = vld [vmem:[%s630_s3 + $0x40] sm:$0xff]  ;;  %v68_v31 = vld [vmem:[%s630_s3 + $0x38] sm:$0xff] }
   0x8   :  { %401 = vmatpush.msra.mxu1 %v366_v4  ;;  %105 = vmatpush.msra.mxu0 %v366_v4  ;;  %v45_v21 = vmax.f32 %v41_v16, 0.0  ;;  %v42_v23 = vadd.f32 %v416_v9, %v34_v18  ;;  %v32_v26 = vmul.f32 %v415_v8, %v24_v24  ;;  %v379_v29 = vld [vmem:[%s630_s3 + $0x88] sm:$0xff]  ;;  %v378_v33 = vld [vmem:[%s630_s3 + $0x80] sm:$0xff]  ;;  %v67_v35 = vld [vmem:[%s630_s3 + $0x30] sm:$0xff] }
   0x9   :  { %200 = vmatpush.msra.mxu2 %v382_v13  ;;  %v39_v30 = vadd.f32 %v416_v9, %v31_v25  ;;  %v66_v37 = vld [vmem:[%s630_s3 + $0x28] sm:$0xff]  ;;  %v65_v39 = vld [vmem:[%s630_s3 + $0x20] sm:$0xff]  ;;  %v64_v40 = vld [vmem:[%s630_s3 + $0x18] sm:$0xff] }
   0xa   :  { %402 = vmatpush.msra.mxu1 %v365_v11  ;;  %106 = vmatpush.msra.mxu0 %v365_v11  ;;  %55 = vst.msk [vmem:[#allocation2 + $0x19] sm:$0xff] %vm52_vm1, %v45_v21  ;;  %v46_v28 = vmax.f32 %v42_v23, 0.0  ;;  %v40_v32 = vadd.f32 %v416_v9, %v32_v26  ;;  %v63_v42 = vld [vmem:[%s630_s3 + $0x10] sm:$0xff]  ;;  %v62_v45 = vld [vmem:[%s630_s3 + $0x8] sm:$0xff]  ;;  %v61_v46 = vld [vmem:[%s630_s3] sm:$0xff] }
   0xb   :  { %201 = vmatpush.msra.mxu2 %v381_v17  ;;  %v43_v34 = vmax.f32 %v39_v30, 0.0  ;;  %v229_v55 = vld [vmem:[%s634_s4 + $0x38] sm:$0xff]  ;;  %v228_v56 = vld [vmem:[%s634_s4 + $0x30] sm:$0xff]  ;;  %v227_v57 = vld [vmem:[%s634_s4 + $0x28] sm:$0xff] }
   0xc   :  { %403 = vmatpush.msra.mxu1 %v364_v15  ;;  %107 = vmatpush.msra.mxu0 %v364_v15  ;;  %56 = vst.msk [vmem:[#allocation2 + $0x21] sm:$0xff] %vm52_vm1, %v46_v28  ;;  %v44_v36 = vmax.f32 %v40_v32, 0.0  ;;  %v226_v58 = vld [vmem:[%s634_s4 + $0x20] sm:$0xff]  ;;  %v225_v59 = vld [vmem:[%s634_s4 + $0x18] sm:$0xff]  ;;  %v224_v60 = vld [vmem:[%s634_s4 + $0x10] sm:$0xff] }
   0xd   :  { %202 = vmatpush.msra.mxu2 %v380_v22  ;;  %53 = vst.msk [vmem:[#allocation2 + $0x1] sm:$0xff] %vm52_vm1, %v43_v34  ;;  %250 = vmatpush.msra.mxu3 %v229_v55  ;;  %v223_v61 = vld [vmem:[%s634_s4 + $0x8] sm:$0xff]  ;;  %v222_v62 = vld [vmem:[%s634_s4] sm:$0xff] }
   0xe   :  { %404 = vmatpush.msra.mxu1 %v363_v20  ;;  %108 = vmatpush.msra.mxu0 %v363_v20  ;;  %54 = vst.msk [vmem:[#allocation2 + $0x9] sm:$0xff] %vm52_vm1, %v44_v36 }
   0xf   :  { %203 = vmatpush.msra.mxu2 %v379_v29  ;;  %251 = vmatpush.msra.mxu3 %v228_v56 }
  0x10   :  { %405 = vmatpush.msra.mxu1 %v362_v27  ;;  %109 = vmatpush.msra.mxu0 %v362_v27 }
  0x11   :  { %204 = vmatpush.msra.mxu2 %v378_v33  ;;  %v71_v38 = vld [vmem:[#allocation2 + $0x19] sm:$0xff]  ;;  %252 = vmatpush.msra.mxu3 %v227_v57 }
  0x12   :  { %143 = vmatpush.msrb.mxu1 %v68_v31  ;;  %v59_v53 = vld [vmem:[#allocation2 + $0x18] sm:$0xff]  ;;  %309 = vmatpush.msrb.mxu0 %v229_v55 }
  0x13   :  { %372 = vmatmul.msk.f32.vlgmr.msra.gmra.mxu1 %vm52_vm1, %v71_v38  ;;  %v72_v44 = vld [vmem:[#allocation2 + $0x21] sm:$0xff]  ;;  %406 = vmatpush.msrb.mxu2 %v229_v55 }
  0x14   :  { %144 = vmatpush.msrb.mxu1 %v67_v35  ;;  %v69_v41 = vld [vmem:[#allocation2 + $0x1] sm:$0xff]  ;;  %310 = vmatpush.msrb.mxu0 %v228_v56 }
  0x15   :  { %v164_v43 = vld [vmem:[#allocation2 + $0x2] sm:$0xff]  ;;  %370 = vmatmul.msk.f32.vlgmr.msra.gmra.mxu0 %vm52_vm1, %v69_v41  ;;  %v165_v48 = vld [vmem:[#allocation2 + $0xa] sm:$0xff]  ;;  %v166_v50 = vld [vmem:[#allocation2 + $0x1a] sm:$0xff]  ;;  %407 = vmatpush.msrb.mxu2 %v228_v56 }
  0x16   :  { %145 = vmatpush.msrb.mxu1 %v66_v37  ;;  %386 = vmatmul.msk.f32.vlgmr.msra.gmra.mxu2 %vm52_vm1, %v164_v43  ;;  %v70_v47 = vld [vmem:[#allocation2 + $0x9] sm:$0xff]  ;;  %v57_v49 = vld [vmem:[#allocation2] sm:$0xff] }
  0x17   :  { %v58_v51 = vld [vmem:[#allocation2 + $0x8] sm:$0xff]  ;;  %v60_v54 = vld [vmem:[#allocation2 + $0x20] sm:$0xff]  ;;  %311 = vmatpush.msrb.mxu0 %v227_v57  ;;  %408 = vmatpush.msrb.mxu2 %v227_v57 }
  0x18   :  { %146 = vmatpush.msrb.mxu1 %v65_v39  ;;  %v167_v52 = vld [vmem:[#allocation2 + $0x22] sm:$0xff]  ;;  %253 = vmatpush.msra.mxu3 %v226_v58 }
  0x19   :  { %312 = vmatpush.msrb.mxu0 %v226_v58  ;;  %409 = vmatpush.msrb.mxu2 %v226_v58 }
  0x1a   :  { %147 = vmatpush.msrb.mxu1 %v64_v40  ;;  %254 = vmatpush.msra.mxu3 %v225_v59 }
  0x1b   :  { %373 = vmatmul.msk.f32.gmra.mxu1 %vm52_vm1, %v72_v44  ;;  %313 = vmatpush.msrb.mxu0 %v225_v59 }
  0x1c   :  { %148 = vmatpush.msrb.mxu1 %v63_v42  ;;  %410 = vmatpush.msrb.mxu2 %v225_v59 }
  0x1d   :  { %371 = vmatmul.msk.f32.gmra.mxu0 %vm52_vm1, %v70_v47  ;;  %255 = vmatpush.msra.mxu3 %v224_v60 }
  0x1e   :  { %149 = vmatpush.msrb.mxu1 %v62_v45  ;;  %387 = vmatmul.msk.f32.gmra.mxu2 %vm52_vm1, %v165_v48 }
  0x1f   :  { %314 = vmatpush.msrb.mxu0 %v224_v60  ;;  %411 = vmatpush.msrb.mxu2 %v224_v60 }
  0x20   :  { %150 = vmatpush.msrb.mxu1 %v61_v46  ;;  %256 = vmatpush.msra.mxu3 %v223_v61 }
  0x21   :  { %315 = vmatpush.msrb.mxu0 %v223_v61  ;;  %412 = vmatpush.msrb.mxu2 %v223_v61 }
  0x22   :  { %257 = vmatpush.msra.mxu3 %v222_v62 }
  0x23   :  { %374 = vmatmul.msk.f32.vlgmr.msrb.gmra.mxu1 %vm52_vm1, %v57_v49  ;;  %316 = vmatpush.msrb.mxu0 %v222_v62 }
  0x24   :  { %413 = vmatpush.msrb.mxu2 %v222_v62 }
  0x26   :  { %388 = vmatmul.msk.f32.gmra.mxu2 %vm52_vm1, %v166_v50 }
  0x2b   :  { %375 = vmatmul.msk.f32.gmra.mxu1 %vm52_vm1, %v58_v51 }
  0x2e   :  { %389 = vmatmul.msk.f32.gmra.mxu2 %vm52_vm1, %v167_v52 }
  0x33   :  { %376 = vmatmul.msk.f32.gmra.mxu1 %vm52_vm1, %v59_v53 }
  0x3b   :  { %377 = vmatmul.msk.f32.gmra.mxu1 %vm52_vm1, %v60_v54 }
  0x90   :  { %v117_v63 = vpop.f32.mrf.mxu1 }
  0x92   :  { %v111_v2 = vpop.f32.mrf.mxu0 }
  0x98   :  { %v120_v0 = vpop.f32.mrf.mxu1 }
  0x99   :  { %v206_v1 = vpop.f32.mrf.mxu2 }
  0x9a   :  { %v114_v8 = vpop.f32.mrf.mxu0 }
  0xa0   :  { %v152_v3 = vpop.f32.mrf.mxu1 }
  0xa1   :  { %v153_v4 = vadd.f32 %v152_v3, %v111_v2  ;;  %v209_v6 = vpop.f32.mrf.mxu2 }
  0xa3   :  { %v218_v5 = vadd.f32 %v206_v1, %v153_v4 }
  0xa5   :  { %v285_v7 = vmul.f32 %v218_v5, %v218_v5  ;;  %343 = vst.msk [vmem:[%s635_s5] sm:$0xff] %vm52_vm1, %v218_v5  ;;  %390 = vmatmul.msk.f32.vlgmr.msra.gmra.mxu3 %vm52_vm1, %v218_v5 }
  0xa7   :  { %394 = vmatmul.msk.f32.vlgmr.msrb.gmra.mxu0 %vm52_vm1, %v285_v7 }
  0xa8   :  { %v155_v9 = vpop.f32.mrf.mxu1 }
  0xa9   :  { %v156_v10 = vadd.f32 %v155_v9, %v114_v8  ;;  %v212_v13 = vpop.f32.mrf.mxu2 }
  0xab   :  { %v219_v11 = vadd.f32 %v209_v6, %v156_v10 }
  0xad   :  { %344 = vst.msk [vmem:[%s635_s5 + $0x8] sm:$0xff] %vm52_vm1, %v219_v11  ;;  %391 = vmatmul.msk.f32.gmra.mxu3 %vm52_vm1, %v219_v11  ;;  %v286_v12 = vmul.f32 %v219_v11, %v219_v11 }
  0xaf   :  { %395 = vmatmul.msk.f32.gmra.mxu0 %vm52_vm1, %v286_v12 }
  0xb0   :  { %v158_v14 = vpop.f32.mrf.mxu1 }
  0xb1   :  { %v159_v15 = vadd.f32 %v158_v14, %v117_v63  ;;  %v215_v19 = vpop.f32.mrf.mxu2 }
  0xb3   :  { %v220_v16 = vadd.f32 %v212_v13, %v159_v15 }
  0xb5   :  { %345 = vst.msk [vmem:[%s635_s5 + $0x10] sm:$0xff] %vm52_vm1, %v220_v16  ;;  %392 = vmatmul.msk.f32.gmra.mxu3 %vm52_vm1, %v220_v16  ;;  %v287_v17 = vmul.f32 %v220_v16, %v220_v16 }
  0xb7   :  { %396 = vmatmul.msk.f32.gmra.mxu0 %vm52_vm1, %v287_v17 }
  0xb8   :  { %v161_v18 = vpop.f32.mrf.mxu1 }
  0xb9   :  { %v162_v20 = vadd.f32 %v161_v18, %v120_v0 }
  0xbb   :  { %v221_v21 = vadd.f32 %v215_v19, %v162_v20 }
  0xbd   :  { %v288_v22 = vmul.f32 %v221_v21, %v221_v21  ;;  %346 = vst.msk [vmem:[%s635_s5 + $0x18] sm:$0xff] %vm52_vm1, %v221_v21  ;;  %393 = vmatmul.msk.f32.gmra.mxu3 %vm52_vm1, %v221_v21 }
  0xbf   :  { %397 = vmatmul.msk.f32.vlgmr.msrb.gmra.mxu2 %vm52_vm1, %v288_v22 }
 0x124   :  { %v318_v23 = vpop.f32.mrf.mxu0 }
 0x125   :  { %v330_v34 = vsel %vm271_vm2, %v318_v23, 0.0 }
 0x128   :  { %v259_v24 = vpop.f32.mrf.mxu3 }
 0x129   :  { %v272_v30 = vsel %vm271_vm2, %v259_v24, 0.0 }
 0x12c   :  { %v321_v26 = vpop.f32.mrf.mxu0 }
 0x12d   :  { %v331_v31 = vsel %vm271_vm2, %v321_v26, 0.0 }
 0x12e   :  { %v332_v36 = vadd.f32 %v331_v31, %v330_v34 }
 0x130   :  { %v262_v25 = vpop.f32.mrf.mxu3 }
 0x131   :  { %v273_v28 = vsel %vm271_vm2, %v262_v25, 0.0 }
 0x132   :  { %v274_v33 = vadd.f32 %v273_v28, %v272_v30 }
 0x134   :  { %v324_v29 = vpop.f32.mrf.mxu0 }
 0x135   :  { %v333_v35 = vsel %vm271_vm2, %v324_v29, 0.0 }
 0x136   :  { %v334_v40 = vadd.f32 %v333_v35, %v332_v36 }
 0x138   :  { %v265_v27 = vpop.f32.mrf.mxu3 }
 0x139   :  { %v275_v32 = vsel %vm271_vm2, %v265_v27, 0.0 }
 0x13a   :  { %v276_v37 = vadd.f32 %v275_v32, %v274_v33 }
 0x140   :  { %v268_v38 = vpop.f32.mrf.mxu3 }
 0x141   :  { %v277_v39 = vsel %vm271_vm2, %v268_v38, 0.0 }
 0x142   :  { %v278_v41 = vadd.f32 %v277_v39, %v276_v37  ;;  %v327_v42 = vpop.f32.mrf.mxu2 }
 0x143   :  { %v335_v43 = vsel %vm271_vm2, %v327_v42, 0.0 }
 0x144   :  { %v279_v44 = vrot.slane %v278_v41, 4  ;;  %v336_v45 = vadd.f32 %v335_v43, %v334_v40 }
 0x146   :  { %v280_v46 = vadd.f32 %v279_v44, %v278_v41  ;;  %v337_v47 = vrot.slane %v336_v45, 4 }
 0x148   :  { %v281_v48 = vrot.slane %v280_v46, 2  ;;  %v338_v49 = vadd.f32 %v337_v47, %v336_v45 }
 0x14a   :  { %v282_v50 = vadd.f32 %v281_v48, %v280_v46  ;;  %v339_v51 = vrot.slane %v338_v49, 2 }
 0x14c   :  { %v283_v52 = vrot.slane %v282_v50, 1  ;;  %v340_v53 = vadd.f32 %v339_v51, %v338_v49 }
 0x14e   :  { %v284_v54 = vadd.f32 %v283_v52, %v282_v50  ;;  %v341_v55 = vrot.slane %v340_v53, 1 }
 0x150   :  { %348 = vst.msk [vmem:[%s636_s6] sm:$0x1] %vm347_vm3, %v284_v54  ;;  %v342_v56 = vadd.f32 %v341_v55, %v340_v53 }
 0x152   :  { %349 = vst.msk [vmem:[%s637_s7] sm:$0x1] %vm347_vm3, %v342_v56 }

// kernel: basic_block_forward.3
= control target key start
LH: loop header
LB: loop body
LE: loop exit
PB: predicated region body
PF: predicated region fallthrough
CT: control target
= control target key end

     0   :  { %vm21_vm0 = vcmask 516096   ;;  %v389_v2 = vmov 0.0   ;;  %vm26_vm1 = vcmask 523264   ;;  %vm245_vm2 = vcmask 31744   ;;  %s586_s1 = inlined_call_operand.vmem [shape: f32[3,64,64], index: 1, kind: input, shape index: {}]   ;;  %s587_s0 = inlined_call_operand.vmem [shape: f32[2,16,64], index: 0, kind: input, shape index: {}]   ;;  %s588_s2 = inlined_call_operand.vmem [shape: f32[64,4], index: 2, kind: input, shape index: {}]   ;;  %s589_s3 = inlined_call_operand.vmem [shape: f32[32,64], index: 3, kind: output, shape index: {0}]   ;;  %s590_s4 = inlined_call_operand.vmem [shape: f32[1,4], index: 4, kind: output, shape index: {1}]   ;;  %s591_s5 = inlined_call_operand.vmem [shape: f32[1,4], index: 5, kind: output, shape index: {2}]  }
   0x1   :  { %v343_v0 = vld [vmem:[%s586_s1 + $0x78] sm:$0xff]  ;;  %v342_v1 = vld [vmem:[%s586_s1 + $0x70] sm:$0xff]  ;;  %22 = vst.msk [vmem:[#allocation2] sm:$0x1] %vm21_vm0, %v389_v2  ;;  %v341_v3 = vld [vmem:[%s586_s1 + $0x68] sm:$0xff]  ;;  %vm321_vm3 = vcmask 24576  }
   0x2   :  { %372 = vmatpush.msra.mxu1 %v343_v0  ;;  %76 = vmatpush.msra.mxu0 %v343_v0  ;;  %23 = vst.msk [vmem:[#allocation2 + $0x18] sm:$0x1] %vm21_vm0, %v389_v2  ;;  %v359_v4 = vld [vmem:[%s586_s1 + $0xb8] sm:$0xff]  ;;  %v358_v5 = vld [vmem:[%s586_s1 + $0xb0] sm:$0xff]  ;;  %v340_v7 = vld [vmem:[%s586_s1 + $0x60] sm:$0xff] }
   0x3   :  { %24 = vst.msk [vmem:[#allocation2 + $0x11] sm:$0x1] %vm21_vm0, %v389_v2  ;;  %171 = vmatpush.msra.mxu2 %v359_v4  ;;  %v19_v6 = vld [vmem:[%s587_s0 + $0x10] sm:$0xff]  ;;  %v357_v8 = vld [vmem:[%s586_s1 + $0xa8] sm:$0xff]  ;;  %v339_v9 = vld [vmem:[%s586_s1 + $0x58] sm:$0xff] }
   0x4   :  { %373 = vmatpush.msra.mxu1 %v342_v1  ;;  %25 = vst.msk [vmem:[#allocation2 + $0x29] sm:$0x1] %vm21_vm0, %v389_v2  ;;  %77 = vmatpush.msra.mxu0 %v342_v1  ;;  %v356_v10 = vld [vmem:[%s586_s1 + $0xa0] sm:$0xff]  ;;  %v20_v11 = vld [vmem:[%s587_s0 + $0x18] sm:$0xff]  ;;  %v338_v12 = vld [vmem:[%s586_s1 + $0x50] sm:$0xff] }
   0x5   :  { %29 = vst.msk [vmem:[#allocation2 + $0x19] sm:$0xff] %vm26_vm1, %v19_v6  ;;  %172 = vmatpush.msra.mxu2 %v358_v5  ;;  %v355_v13 = vld [vmem:[%s586_s1 + $0x98] sm:$0xff]  ;;  %v17_v14 = vld [vmem:[%s587_s0] sm:$0xff]  ;;  %v18_v15 = vld [vmem:[%s587_s0 + $0x8] sm:$0xff] }
   0x6   :  { %374 = vmatpush.msra.mxu1 %v341_v3  ;;  %78 = vmatpush.msra.mxu0 %v341_v3  ;;  %30 = vst.msk [vmem:[#allocation2 + $0x21] sm:$0xff] %vm26_vm1, %v20_v11  ;;  %v337_v16 = vld [vmem:[%s586_s1 + $0x48] sm:$0xff]  ;;  %v354_v17 = vld [vmem:[%s586_s1 + $0x90] sm:$0xff]  ;;  %v336_v18 = vld [vmem:[%s586_s1 + $0x40] sm:$0xff] }
   0x7   :  { %173 = vmatpush.msra.mxu2 %v357_v8  ;;  %27 = vst.msk [vmem:[#allocation2 + $0x1] sm:$0xff] %vm26_vm1, %v17_v14  ;;  %v353_v19 = vld [vmem:[%s586_s1 + $0x88] sm:$0xff]  ;;  %v42_v21 = vld [vmem:[%s586_s1 + $0x38] sm:$0xff]  ;;  %v352_v22 = vld [vmem:[%s586_s1 + $0x80] sm:$0xff] }
   0x8   :  { %375 = vmatpush.msra.mxu1 %v340_v7  ;;  %79 = vmatpush.msra.mxu0 %v340_v7  ;;  %28 = vst.msk [vmem:[#allocation2 + $0x9] sm:$0xff] %vm26_vm1, %v18_v15  ;;  %v41_v23 = vld [vmem:[%s586_s1 + $0x30] sm:$0xff]  ;;  %v40_v26 = vld [vmem:[%s586_s1 + $0x28] sm:$0xff]  ;;  %v39_v27 = vld [vmem:[%s586_s1 + $0x20] sm:$0xff] }
   0x9   :  { %174 = vmatpush.msra.mxu2 %v356_v10  ;;  %v38_v29 = vld [vmem:[%s586_s1 + $0x18] sm:$0xff]  ;;  %v37_v32 = vld [vmem:[%s586_s1 + $0x10] sm:$0xff]  ;;  %v36_v33 = vld [vmem:[%s586_s1 + $0x8] sm:$0xff] }
   0xa   :  { %376 = vmatpush.msra.mxu1 %v339_v9  ;;  %80 = vmatpush.msra.mxu0 %v339_v9  ;;  %v35_v34 = vld [vmem:[%s586_s1] sm:$0xff]  ;;  %v203_v41 = vld [vmem:[%s588_s2 + $0x38] sm:$0xff]  ;;  %v202_v42 = vld [vmem:[%s588_s2 + $0x30] sm:$0xff] }
   0xb   :  { %175 = vmatpush.msra.mxu2 %v355_v13  ;;  %224 = vmatpush.msra.mxu3 %v203_v41  ;;  %v201_v43 = vld [vmem:[%s588_s2 + $0x28] sm:$0xff]  ;;  %v200_v44 = vld [vmem:[%s588_s2 + $0x20] sm:$0xff]  ;;  %v199_v45 = vld [vmem:[%s588_s2 + $0x18] sm:$0xff] }
   0xc   :  { %377 = vmatpush.msra.mxu1 %v338_v12  ;;  %81 = vmatpush.msra.mxu0 %v338_v12  ;;  %v45_v20 = vld [vmem:[#allocation2 + $0x19] sm:$0xff]  ;;  %v198_v46 = vld [vmem:[%s588_s2 + $0x10] sm:$0xff]  ;;  %v197_v47 = vld [vmem:[%s588_s2 + $0x8] sm:$0xff] }
   0xd   :  { %176 = vmatpush.msra.mxu2 %v354_v17  ;;  %v46_v28 = vld [vmem:[#allocation2 + $0x21] sm:$0xff]  ;;  %v33_v39 = vld [vmem:[#allocation2 + $0x18] sm:$0xff]  ;;  %225 = vmatpush.msra.mxu3 %v202_v42 }
   0xe   :  { %378 = vmatpush.msra.mxu1 %v337_v16  ;;  %82 = vmatpush.msra.mxu0 %v337_v16  ;;  %v43_v24 = vld [vmem:[#allocation2 + $0x1] sm:$0xff] }
   0xf   :  { %177 = vmatpush.msra.mxu2 %v353_v19  ;;  %v138_v25 = vld [vmem:[#allocation2 + $0x2] sm:$0xff]  ;;  %v139_v30 = vld [vmem:[#allocation2 + $0xa] sm:$0xff]  ;;  %v140_v36 = vld [vmem:[#allocation2 + $0x1a] sm:$0xff]  ;;  %226 = vmatpush.msra.mxu3 %v201_v43 }
  0x10   :  { %379 = vmatpush.msra.mxu1 %v336_v18  ;;  %83 = vmatpush.msra.mxu0 %v336_v18  ;;  %v44_v31 = vld [vmem:[#allocation2 + $0x9] sm:$0xff]  ;;  %v31_v35 = vld [vmem:[#allocation2] sm:$0xff] }
  0x11   :  { %346 = vmatmul.msk.f32.vlgmr.msra.gmra.mxu1 %vm26_vm1, %v45_v20  ;;  %178 = vmatpush.msra.mxu2 %v352_v22  ;;  %v32_v37 = vld [vmem:[#allocation2 + $0x8] sm:$0xff]  ;;  %v34_v40 = vld [vmem:[#allocation2 + $0x20] sm:$0xff] }
  0x12   :  { %117 = vmatpush.msrb.mxu1 %v42_v21  ;;  %360 = vmatmul.msk.f32.vlgmr.msra.gmra.mxu2 %vm26_vm1, %v138_v25  ;;  %v141_v38 = vld [vmem:[#allocation2 + $0x22] sm:$0xff] }
  0x13   :  { %344 = vmatmul.msk.f32.vlgmr.msra.gmra.mxu0 %vm26_vm1, %v43_v24  ;;  %380 = vmatpush.msrb.mxu2 %v203_v41  ;;  %v196_v48 = vld [vmem:[%s588_s2] sm:$0xff] }
  0x14   :  { %118 = vmatpush.msrb.mxu1 %v41_v23  ;;  %283 = vmatpush.msrb.mxu0 %v203_v41 }
  0x15   :  { %381 = vmatpush.msrb.mxu2 %v202_v42  ;;  %227 = vmatpush.msra.mxu3 %v200_v44 }
  0x16   :  { %119 = vmatpush.msrb.mxu1 %v40_v26  ;;  %284 = vmatpush.msrb.mxu0 %v202_v42 }
  0x17   :  { %382 = vmatpush.msrb.mxu2 %v201_v43  ;;  %228 = vmatpush.msra.mxu3 %v199_v45 }
  0x18   :  { %120 = vmatpush.msrb.mxu1 %v39_v27  ;;  %285 = vmatpush.msrb.mxu0 %v201_v43 }
  0x19   :  { %347 = vmatmul.msk.f32.gmra.mxu1 %vm26_vm1, %v46_v28  ;;  %383 = vmatpush.msrb.mxu2 %v200_v44 }
  0x1a   :  { %121 = vmatpush.msrb.mxu1 %v38_v29  ;;  %361 = vmatmul.msk.f32.gmra.mxu2 %vm26_vm1, %v139_v30 }
  0x1b   :  { %345 = vmatmul.msk.f32.gmra.mxu0 %vm26_vm1, %v44_v31  ;;  %384 = vmatpush.msrb.mxu2 %v199_v45 }
  0x1c   :  { %122 = vmatpush.msrb.mxu1 %v37_v32  ;;  %286 = vmatpush.msrb.mxu0 %v200_v44 }
  0x1d   :  { %229 = vmatpush.msra.mxu3 %v198_v46  ;;  %385 = vmatpush.msrb.mxu2 %v198_v46 }
  0x1e   :  { %123 = vmatpush.msrb.mxu1 %v36_v33  ;;  %287 = vmatpush.msrb.mxu0 %v199_v45 }
  0x1f   :  { %230 = vmatpush.msra.mxu3 %v197_v47  ;;  %386 = vmatpush.msrb.mxu2 %v197_v47 }
  0x20   :  { %124 = vmatpush.msrb.mxu1 %v35_v34  ;;  %288 = vmatpush.msrb.mxu0 %v198_v46 }
  0x21   :  { %348 = vmatmul.msk.f32.vlgmr.msrb.gmra.mxu1 %vm26_vm1, %v31_v35  ;;  %231 = vmatpush.msra.mxu3 %v196_v48 }
  0x22   :  { %362 = vmatmul.msk.f32.gmra.mxu2 %vm26_vm1, %v140_v36  ;;  %289 = vmatpush.msrb.mxu0 %v197_v47 }
  0x23   :  { %387 = vmatpush.msrb.mxu2 %v196_v48 }
  0x24   :  { %290 = vmatpush.msrb.mxu0 %v196_v48 }
  0x29   :  { %349 = vmatmul.msk.f32.gmra.mxu1 %vm26_vm1, %v32_v37 }
  0x2a   :  { %363 = vmatmul.msk.f32.gmra.mxu2 %vm26_vm1, %v141_v38 }
  0x31   :  { %350 = vmatmul.msk.f32.gmra.mxu1 %vm26_vm1, %v33_v39 }
  0x39   :  { %351 = vmatmul.msk.f32.gmra.mxu1 %vm26_vm1, %v34_v40 }
  0x8e   :  { %v91_v49 = vpop.f32.mrf.mxu1 }
  0x90   :  { %v85_v52 = vpop.f32.mrf.mxu0 }
  0x95   :  { %v180_v51 = vpop.f32.mrf.mxu2 }
  0x96   :  { %v94_v50 = vpop.f32.mrf.mxu1 }
  0x98   :  { %v88_v58 = vpop.f32.mrf.mxu0 }
  0x9d   :  { %v183_v56 = vpop.f32.mrf.mxu2 }
  0x9e   :  { %v126_v53 = vpop.f32.mrf.mxu1 }
  0x9f   :  { %v127_v54 = vadd.f32 %v126_v53, %v85_v52 }
  0xa1   :  { %v192_v55 = vadd.f32 %v180_v51, %v127_v54 }
  0xa3   :  { %v259_v57 = vmul.f32 %v192_v55, %v192_v55  ;;  %317 = vst.msk [vmem:[%s589_s3] sm:$0xff] %vm26_vm1, %v192_v55  ;;  %364 = vmatmul.msk.f32.vlgmr.msra.gmra.mxu3 %vm26_vm1, %v192_v55 }
  0xa5   :  { %368 = vmatmul.msk.f32.vlgmr.msrb.gmra.mxu0 %vm26_vm1, %v259_v57  ;;  %v186_v63 = vpop.f32.mrf.mxu2 }
  0xa6   :  { %v129_v59 = vpop.f32.mrf.mxu1 }
  0xa7   :  { %v130_v60 = vadd.f32 %v129_v59, %v88_v58 }
  0xa9   :  { %v193_v61 = vadd.f32 %v183_v56, %v130_v60 }
  0xab   :  { %318 = vst.msk [vmem:[%s589_s3 + $0x8] sm:$0xff] %vm26_vm1, %v193_v61  ;;  %365 = vmatmul.msk.f32.gmra.mxu3 %vm26_vm1, %v193_v61  ;;  %v260_v62 = vmul.f32 %v193_v61, %v193_v61 }
  0xad   :  { %369 = vmatmul.msk.f32.gmra.mxu0 %vm26_vm1, %v260_v62  ;;  %v189_v5 = vpop.f32.mrf.mxu2 }
  0xae   :  { %v132_v0 = vpop.f32.mrf.mxu1 }
  0xaf   :  { %v133_v1 = vadd.f32 %v132_v0, %v91_v49 }
  0xb1   :  { %v194_v2 = vadd.f32 %v186_v63, %v133_v1 }
  0xb3   :  { %319 = vst.msk [vmem:[%s589_s3 + $0x10] sm:$0xff] %vm26_vm1, %v194_v2  ;;  %366 = vmatmul.msk.f32.gmra.mxu3 %vm26_vm1, %v194_v2  ;;  %v261_v3 = vmul.f32 %v194_v2, %v194_v2 }
  0xb5   :  { %370 = vmatmul.msk.f32.gmra.mxu0 %vm26_vm1, %v261_v3 }
  0xb6   :  { %v135_v4 = vpop.f32.mrf.mxu1 }
  0xb7   :  { %v136_v6 = vadd.f32 %v135_v4, %v94_v50 }
  0xb9   :  { %v195_v7 = vadd.f32 %v189_v5, %v136_v6 }
  0xbb   :  { %v262_v8 = vmul.f32 %v195_v7, %v195_v7  ;;  %320 = vst.msk [vmem:[%s589_s3 + $0x18] sm:$0xff] %vm26_vm1, %v195_v7  ;;  %367 = vmatmul.msk.f32.gmra.mxu3 %vm26_vm1, %v195_v7 }
  0xbd   :  { %371 = vmatmul.msk.f32.vlgmr.msrb.gmra.mxu2 %vm26_vm1, %v262_v8 }
 0x122   :  { %v292_v9 = vpop.f32.mrf.mxu0 }
 0x123   :  { %v304_v20 = vsel %vm245_vm2, %v292_v9, 0.0 }
 0x126   :  { %v233_v10 = vpop.f32.mrf.mxu3 }
 0x127   :  { %v246_v16 = vsel %vm245_vm2, %v233_v10, 0.0 }
 0x12a   :  { %v295_v12 = vpop.f32.mrf.mxu0 }
 0x12b   :  { %v305_v17 = vsel %vm245_vm2, %v295_v12, 0.0 }
 0x12c   :  { %v306_v22 = vadd.f32 %v305_v17, %v304_v20 }
 0x12e   :  { %v236_v11 = vpop.f32.mrf.mxu3 }
 0x12f   :  { %v247_v14 = vsel %vm245_vm2, %v236_v11, 0.0 }
 0x130   :  { %v248_v19 = vadd.f32 %v247_v14, %v246_v16 }
 0x132   :  { %v298_v15 = vpop.f32.mrf.mxu0 }
 0x133   :  { %v307_v21 = vsel %vm245_vm2, %v298_v15, 0.0 }
 0x134   :  { %v308_v26 = vadd.f32 %v307_v21, %v306_v22 }
 0x136   :  { %v239_v13 = vpop.f32.mrf.mxu3 }
 0x137   :  { %v249_v18 = vsel %vm245_vm2, %v239_v13, 0.0 }
 0x138   :  { %v250_v23 = vadd.f32 %v249_v18, %v248_v19 }
 0x13e   :  { %v242_v24 = vpop.f32.mrf.mxu3 }
 0x13f   :  { %v251_v25 = vsel %vm245_vm2, %v242_v24, 0.0 }
 0x140   :  { %v252_v27 = vadd.f32 %v251_v25, %v250_v23  ;;  %v301_v28 = vpop.f32.mrf.mxu2 }
 0x141   :  { %v309_v29 = vsel %vm245_vm2, %v301_v28, 0.0 }
 0x142   :  { %v253_v30 = vrot.slane %v252_v27, 4  ;;  %v310_v31 = vadd.f32 %v309_v29, %v308_v26 }
 0x144   :  { %v254_v32 = vadd.f32 %v253_v30, %v252_v27  ;;  %v311_v33 = vrot.slane %v310_v31, 4 }
 0x146   :  { %v255_v34 = vrot.slane %v254_v32, 2  ;;  %v312_v35 = vadd.f32 %v311_v33, %v310_v31 }
 0x148   :  { %v256_v36 = vadd.f32 %v255_v34, %v254_v32  ;;  %v313_v37 = vrot.slane %v312_v35, 2 }
 0x14a   :  { %v257_v38 = vrot.slane %v256_v36, 1  ;;  %v314_v39 = vadd.f32 %v313_v37, %v312_v35 }
 0x14c   :  { %v258_v40 = vadd.f32 %v257_v38, %v256_v36  ;;  %v315_v41 = vrot.slane %v314_v39, 1 }
 0x14e   :  { %322 = vst.msk [vmem:[%s590_s4] sm:$0x1] %vm321_vm3, %v258_v40  ;;  %v316_v42 = vadd.f32 %v315_v41, %v314_v39 }
 0x150   :  { %323 = vst.msk [vmem:[%s591_s5] sm:$0x1] %vm321_vm3, %v316_v42 }

// kernel: basic_block_forward.5
= control target key start
LH: loop header
LB: loop body
LE: loop exit
PB: predicated region body
PF: predicated region fallthrough
CT: control target
= control target key end

     0   :  { %vm49_vm0 = vcmask 523264   ;;  %s127_s0 = inlined_call_operand.vmem [shape: f32[32,64], index: 0, kind: input, shape index: {}]   ;;  %s128_s2 = inlined_call_operand.vmem [shape: f32[1,64], index: 2, kind: input, shape index: {}]   ;;  %s129_s3 = inlined_call_operand.vmem [shape: f32[1,64], index: 3, kind: input, shape index: {}]   ;;  %s130_s1 = inlined_call_operand.vmem [shape: f32[32,64], index: 1, kind: input, shape index: {}]   ;;  %s131_s4 = inlined_call_operand.vmem [shape: f32[32,64], index: 4, kind: output, shape index: {}]  }
   0x1   :  { %v17_v0 = vld [vmem:[%s127_s0] sm:$0xff]  ;;  %v18_v4 = vld [vmem:[%s127_s0 + $0x8] sm:$0xff]  ;;  %v19_v5 = vld [vmem:[%s127_s0 + $0x10] sm:$0xff] }
   0x2   :  { %v58_v1 = vld [vmem:[%s128_s2] ss:$0 sm:$0xff]  ;;  %v20_v9 = vld [vmem:[%s127_s0 + $0x18] sm:$0xff]  ;;  %v38_v11 = vld [vmem:[%s130_s1 + $0x8] sm:$0xff] }
   0x3   :  { %v59_v2 = vld [vmem:[%s129_s3] ss:$0 sm:$0xff]  ;;  %v25_v3 = vmul.f32 %v58_v1, %v17_v0  ;;  %v26_v7 = vmul.f32 %v58_v1, %v18_v4  ;;  %v27_v8 = vmul.f32 %v58_v1, %v19_v5  ;;  %v39_v12 = vld [vmem:[%s130_s1 + $0x10] sm:$0xff]  ;;  %v28_v13 = vmul.f32 %v58_v1, %v20_v9  ;;  %v40_v16 = vld [vmem:[%s130_s1 + $0x18] sm:$0xff] }
   0x4   :  { %v37_v6 = vld [vmem:[%s130_s1] sm:$0xff] }
   0x5   :  { %v33_v10 = vadd.f32 %v59_v2, %v25_v3  ;;  %v34_v14 = vadd.f32 %v59_v2, %v26_v7  ;;  %v35_v15 = vadd.f32 %v59_v2, %v27_v8  ;;  %v36_v18 = vadd.f32 %v59_v2, %v28_v13 }
   0x7   :  { %v41_v17 = vadd.f32 %v37_v6, %v33_v10  ;;  %v42_v19 = vadd.f32 %v38_v11, %v34_v14  ;;  %v43_v20 = vadd.f32 %v39_v12, %v35_v15  ;;  %v44_v22 = vadd.f32 %v40_v16, %v36_v18 }
   0x9   :  { %v45_v21 = vmax.f32 %v41_v17, 0.0  ;;  %v46_v23 = vmax.f32 %v42_v19, 0.0  ;;  %v47_v24 = vmax.f32 %v43_v20, 0.0  ;;  %v48_v25 = vmax.f32 %v44_v22, 0.0 }
   0xb   :  { %50 = vst.msk [vmem:[%s131_s4] sm:$0xff] %vm49_vm0, %v45_v21 }
   0xc   :  { %51 = vst.msk [vmem:[%s131_s4 + $0x8] sm:$0xff] %vm49_vm0, %v46_v23 }
   0xd   :  { %52 = vst.msk [vmem:[%s131_s4 + $0x10] sm:$0xff] %vm49_vm0, %v47_v24 }
   0xe   :  { %53 = vst.msk [vmem:[%s131_s4 + $0x18] sm:$0xff] %vm49_vm0, %v48_v25 }

</bundles_post_ra>
